<compile_context>
chip_gen: v7x
topology: tpu7x:2x2x1
jax: 0.10.0
libtpu: 0.0.40
codegen_flags: <defaults>
</compile_context>

<pallas_src>
import jax
import jax.numpy as jnp
from jax.experimental import pallas as pl
from jax.experimental.pallas import tpu as pltpu

LANE = 128
ACC_ROWS = 128            # fixed-size accumulator: 128x128 f32 = 64 KiB
MAX_TILE_ROWS = 4096      # 4096x128 f32 = 2 MiB/block; 2 inputs x 2 buffers = 8 MiB
VMEM_LIMIT_BYTES = 32 * 1024 * 1024


def _round_up(n, m):
    return ((n + m - 1) // m) * m


def _sublane_packing(dtype):
    """Rows per packed sublane group: 8 for 32-bit, 16 for 16-bit, 32 for 8-bit."""
    return {4: 8, 2: 16, 1: 32}.get(jnp.dtype(dtype).itemsize, 8)


def _detect_num_tensorcores():
    """Best-effort TensorCores-per-chip: 2 on v7x, 1 on v5e/v6e (default 1)."""
    try:
        kind = str(getattr(jax.devices()[0], "device_kind", "")).lower()
        if "v7" in kind:
            return 2
    except Exception:
        pass
    return 1


def _make_mse_kernel(total_rows, tile_rows, acc_rows, nblocks, blocks_per_core):
    """Kernel computing per-core partial sums of (x - t)^2."""
    chunks = tile_rows // acc_rows  # static

    def kernel(x_ref, t_ref, partial_ref, acc_ref):
        p = pl.program_id(0)   # core-parallel axis (size 1 on single-TC chips)
        i = pl.program_id(1)   # reduction axis ("arbitrary")

        # Reset the fixed-size VMEM accumulator at the start of each core's range.
        @pl.when(i == 0)
        def _():
            acc_ref[...] = jnp.zeros_like(acc_ref)

        # Which row-block this step covers (index_map clamps duplicates when
        # nblocks does not split evenly across cores; detect that here).
        raw_block = p * blocks_per_core + i
        valid_block = raw_block < nblocks
        row_start = jnp.minimum(raw_block, nblocks - 1) * tile_rows
        is_full = jnp.logical_and(valid_block, row_start + tile_rows <= total_rows)

        def accumulate(sq):
            if chunks == 1:
                acc_ref[...] += sq
            else:
                # Leading-axis fold: pure VPU adds across vregs, no XLU.
                acc_ref[...] += sq.reshape(chunks, acc_rows, LANE).sum(axis=0)

        @pl.when(is_full)
        def _():
            d = x_ref[...].astype(jnp.float32) - t_ref[...].astype(jnp.float32)
            accumulate(d * d)

        @pl.when(jnp.logical_not(is_full))
        def _():
            row_ids = row_start + jax.lax.broadcasted_iota(
                jnp.int32, (tile_rows, LANE), 0)
            mask = jnp.logical_and(row_ids < total_rows, valid_block)
            d = x_ref[...].astype(jnp.float32) - t_ref[...].astype(jnp.float32)
            # Select (not multiply): padded-region NaN/Inf garbage must not propagate.
            accumulate(jnp.where(mask, d * d, jnp.float32(0.0)))

        # Single cross-lane/sublane reduce only at the end of this core's range.
        @pl.when(i == pl.num_programs(1) - 1)
        def _():
            partial_ref[0, 0] = jnp.sum(acc_ref[...])

    return kernel


def content_loss_forward(x, target):
    """Pallas implementation of ContentLoss.forward.

    Returns (output, loss): output is the input passed through unchanged
    (matching the PyTorch module) and loss == mse_loss(x, target).
    """
    assert x.shape == target.shape, "input/target shapes must match"
    assert x.dtype == target.dtype, "input/target dtypes must match"
    total_n = x.size
    # TODO(synk): handle element counts that are not a multiple of 128 (needs a
    # masked 1-D tail); not required for typical conv feature-map shapes.
    assert total_n % LANE == 0, "total element count must be a multiple of 128"
    rows = total_n // LANE

    # Keep native dtype (no f32 upcast in HBM, no jnp.pad); the kernel casts
    # on-chip. NOTE: in a style-transfer optimization loop, hoist/cache the
    # reshaped target outside the traced step so it is not re-materialized.
    x2 = x.reshape(rows, LANE)
    t2 = target.reshape(rows, LANE)

    # Tile rows: respect the dtype's sublane packing; for large inputs also
    # make tile_rows a multiple of the fixed accumulator height.
    packing = _sublane_packing(x.dtype)
    tile_rows = min(MAX_TILE_ROWS, _round_up(rows, packing))
    if tile_rows >= ACC_ROWS:
        acc_rows = ACC_ROWS
        tile_rows = min(_round_up(tile_rows, acc_rows), MAX_TILE_ROWS)
    else:
        acc_rows = tile_rows  # tiny input: single small block, acc == block

    nblocks = pl.cdiv(rows, tile_rows)

    # Generation-dependent core axis: 2 only on 2-TensorCore chips (v7x).
    ncores = min(_detect_num_tensorcores(), nblocks) or 1
    blocks_per_core = pl.cdiv(nblocks, ncores)
    grid = (ncores, blocks_per_core)
    dim_sems = ("parallel", "arbitrary") if ncores > 1 else ("arbitrary", "arbitrary")

    def in_index_map(p, i):
        # Clamp so duplicate trailing steps (when nblocks does not split evenly
        # across cores) stay in bounds; the kernel masks their contribution.
        return (jnp.minimum(p * blocks_per_core + i, nblocks - 1), 0)

    kernel = _make_mse_kernel(rows, tile_rows, acc_rows, nblocks, blocks_per_core)

    cost = pl.CostEstimate(
        flops=3 * total_n,                                   # sub, mul, add
        transcendentals=0,
        bytes_accessed=2 * total_n * x.dtype.itemsize + ncores * 4,
    )

    partials = pl.pallas_call(
        kernel,
        out_shape=jax.ShapeDtypeStruct((ncores, 1), jnp.float32),
        grid_spec=pltpu.PrefetchScalarGridSpec(
            num_scalar_prefetch=0,
            grid=grid,
            in_specs=[
                pl.BlockSpec((tile_rows, LANE), in_index_map),
                pl.BlockSpec((tile_rows, LANE), in_index_map),
            ],
            out_specs=pl.BlockSpec(
                (1, 1), lambda p, i: (p, 0), memory_space=pltpu.SMEM
            ),
            scratch_shapes=[pltpu.VMEM((acc_rows, LANE), jnp.float32)],
        ),
        compiler_params=pltpu.CompilerParams(
            dimension_semantics=dim_sems,
            vmem_limit_bytes=VMEM_LIMIT_BYTES,
        ),
        cost_estimate=cost,
    )(x2, t2)

    loss = jnp.sum(partials) / jnp.float32(total_n)
    # Module returns its input unchanged; the loss is the side product.
    return x, loss


if __name__ == "__main__":
    key = jax.random.PRNGKey(0)
    k1, k2 = jax.random.split(key)

    # Small NCHW feature-map shapes (batch=2, channels=4, spatial=16).
    x = jax.random.normal(k1, (2, 4, 16, 16), dtype=jnp.float32)
    target = jax.random.normal(k2, (2, 4, 16, 16), dtype=jnp.float32)

    out, loss = content_loss_forward(x, target)
    out = jax.block_until_ready(out)
    loss = jax.block_until_ready(loss)

    # Correctness check against plain-JAX reference.
    ref_loss = jnp.mean((x - target) ** 2)
    assert jnp.allclose(loss, ref_loss, rtol=1e-5, atol=1e-6), (loss, ref_loss)
    assert jnp.array_equal(out, x)

    # Larger ragged case exercising multi-block + masked-tail paths.
    xb = jax.random.normal(k1, (3, 8, 33, 128), dtype=jnp.float32)
    tb = jax.random.normal(k2, (3, 8, 33, 128), dtype=jnp.float32)
    _, loss_b = content_loss_forward(xb, tb)
    loss_b = jax.block_until_ready(loss_b)
    ref_b = jnp.mean((xb - tb) ** 2)
    assert jnp.allclose(loss_b, ref_b, rtol=1e-5, atol=1e-6), (loss_b, ref_b)

    print("KERNEL_OK")
</pallas_src>

<mosaic_0001>
module attributes {stable_mosaic.version = 11 : i64} {
  func.func @kernel(%arg0: i32, %arg1: i32, %arg2: memref<16x128xf32, #tpu.memory_space<vmem>>, %arg3: memref<16x128xf32, #tpu.memory_space<vmem>>, %arg4: memref<1x1xf32, #tpu.memory_space<smem>>, %arg5: memref<16x128xf32, #tpu.memory_space<vmem>>) attributes {dimension_semantics = [#tpu.dimension_semantics<arbitrary>, #tpu.dimension_semantics<arbitrary>], iteration_bounds = array<i64: 1, 1>, scalar_prefetch = 0 : i64, scratch_operands = 1 : i64, tpu.core_type = #tpu.core_type<tc>, window_params = [{transform_indices = @transform_0, window_bounds = array<i64: 16, 128>}, {transform_indices = @transform_1, window_bounds = array<i64: 16, 128>}, {transform_indices = @transform_2, window_bounds = array<i64: 1, 1>}]} {
    %c0_i32 = arith.constant 0 : i32
    %0 = arith.cmpi eq, %arg1, %c0_i32 : i32
    %1 = arith.extui %0 : i1 to i32
    %c0_i32_0 = arith.constant 0 : i32
    %2 = arith.cmpi ne, %1, %c0_i32_0 : i32
    scf.if %2 {
      %cst = arith.constant 0.000000e+00 : f32
      %19 = vector.broadcast %cst : f32 to vector<16x128xf32>
      %c0 = arith.constant 0 : index
      %c0_9 = arith.constant 0 : index
      %20 = vector.load %arg5[%c0, %c0_9] : memref<16x128xf32, #tpu.memory_space<vmem>>, vector<16x128xf32>
      tpu.vector_store %arg5[%c0, %c0_9], %19 {strides = array<i32>} : memref<16x128xf32, #tpu.memory_space<vmem>>, vector<16x128xf32>,
    } else {
    }
    %c1_i32 = arith.constant 1 : i32
    %3 = arith.muli %arg0, %c1_i32 : i32
    %4 = arith.addi %3, %arg1 : i32
    %c1_i32_1 = arith.constant 1 : i32
    %5 = arith.cmpi slt, %4, %c1_i32_1 : i32
    %c0_i32_2 = arith.constant 0 : i32
    %6 = arith.minsi %4, %c0_i32_2 : i32
    %c16_i32 = arith.constant 16 : i32
    %7 = arith.muli %6, %c16_i32 : i32
    %c16_i32_3 = arith.constant 16 : i32
    %8 = arith.addi %7, %c16_i32_3 : i32
    %c16_i32_4 = arith.constant 16 : i32
    %9 = arith.cmpi sle, %8, %c16_i32_4 : i32
    %10 = arith.andi %5, %9 : i1
    %11 = arith.extui %10 : i1 to i32
    %c0_i32_5 = arith.constant 0 : i32
    %12 = arith.cmpi ne, %11, %c0_i32_5 : i32
    scf.if %12 {
      %c0 = arith.constant 0 : index
      %c0_9 = arith.constant 0 : index
      %19 = vector.load %arg2[%c0, %c0_9] : memref<16x128xf32, #tpu.memory_space<vmem>>, vector<16x128xf32>
      %c0_10 = arith.constant 0 : index
      %c0_11 = arith.constant 0 : index
      %20 = vector.load %arg3[%c0_10, %c0_11] : memref<16x128xf32, #tpu.memory_space<vmem>>, vector<16x128xf32>
      %21 = arith.subf %19, %20 : vector<16x128xf32>
      %22 = arith.mulf %21, %21 : vector<16x128xf32>
      %c0_12 = arith.constant 0 : index
      %c0_13 = arith.constant 0 : index
      %23 = vector.load %arg5[%c0_12, %c0_13] : memref<16x128xf32, #tpu.memory_space<vmem>>, vector<16x128xf32>
      %24 = arith.addf %23, %22 : vector<16x128xf32>
      %c0_14 = arith.constant 0 : index
      %c0_15 = arith.constant 0 : index
      %25 = vector.load %arg5[%c0_14, %c0_15] : memref<16x128xf32, #tpu.memory_space<vmem>>, vector<16x128xf32>
      tpu.vector_store %arg5[%c0_14, %c0_15], %24 {strides = array<i32>} : memref<16x128xf32, #tpu.memory_space<vmem>>, vector<16x128xf32>,
    } else {
    }
    %true = arith.constant true
    %13 = arith.xori %10, %true : i1
    %14 = arith.extui %13 : i1 to i32
    %c0_i32_6 = arith.constant 0 : i32
    %15 = arith.cmpi ne, %14, %c0_i32_6 : i32
    scf.if %15 {
      %19 = tpu.iota {dimensions = array<i32: 0>} : vector<16x128xi32>
      %20 = vector.broadcast %7 : i32 to vector<16x128xi32>
      %21 = arith.addi %20, %19 : vector<16x128xi32>
      %c16_i32_9 = arith.constant 16 : i32
      %22 = vector.broadcast %c16_i32_9 : i32 to vector<16x128xi32>
      %23 = arith.cmpi slt, %21, %22 : vector<16x128xi32>
      %24 = vector.broadcast %5 : i1 to vector<16x128xi1>
      %25 = arith.andi %23, %24 : vector<16x128xi1>
      %c0 = arith.constant 0 : index
      %c0_10 = arith.constant 0 : index
      %26 = vector.load %arg2[%c0, %c0_10] : memref<16x128xf32, #tpu.memory_space<vmem>>, vector<16x128xf32>
      %c0_11 = arith.constant 0 : index
      %c0_12 = arith.constant 0 : index
      %27 = vector.load %arg3[%c0_11, %c0_12] : memref<16x128xf32, #tpu.memory_space<vmem>>, vector<16x128xf32>
      %28 = arith.subf %26, %27 : vector<16x128xf32>
      %29 = arith.mulf %28, %28 : vector<16x128xf32>
      %cst = arith.constant 0.000000e+00 : f32
      %30 = vector.broadcast %cst : f32 to vector<16x128xf32>
      %31 = arith.select %25, %29, %30 : vector<16x128xi1>, vector<16x128xf32>
      %c0_13 = arith.constant 0 : index
      %c0_14 = arith.constant 0 : index
      %32 = vector.load %arg5[%c0_13, %c0_14] : memref<16x128xf32, #tpu.memory_space<vmem>>, vector<16x128xf32>
      %33 = arith.addf %32, %31 : vector<16x128xf32>
      %c0_15 = arith.constant 0 : index
      %c0_16 = arith.constant 0 : index
      %34 = vector.load %arg5[%c0_15, %c0_16] : memref<16x128xf32, #tpu.memory_space<vmem>>, vector<16x128xf32>
      tpu.vector_store %arg5[%c0_15, %c0_16], %33 {strides = array<i32>} : memref<16x128xf32, #tpu.memory_space<vmem>>, vector<16x128xf32>,
    } else {
    }
    %c0_i32_7 = arith.constant 0 : i32
    %16 = arith.cmpi eq, %arg1, %c0_i32_7 : i32
    %17 = arith.extui %16 : i1 to i32
    %c0_i32_8 = arith.constant 0 : i32
    %18 = arith.cmpi ne, %17, %c0_i32_8 : i32
    scf.if %18 {
      %c0 = arith.constant 0 : index
      %c0_9 = arith.constant 0 : index
      %19 = vector.load %arg5[%c0, %c0_9] : memref<16x128xf32, #tpu.memory_space<vmem>>, vector<16x128xf32>
      %20 = vector.shape_cast %19 : vector<16x128xf32> to vector<1x16x128xf32>
      %cst = arith.constant dense<0.000000e+00> : vector<1xf32>
      %21 = vector.multi_reduction <add>, %20, %cst [1, 2] : vector<1x16x128xf32> to vector<1xf32>
      %22 = vector.shape_cast %21 : vector<1xf32> to vector<1x1x1xf32>
      %23 = vector.extract %22[0, 0, 0] : f32 from vector<1x1x1xf32>
      %c0_10 = arith.constant 0 : index
      %c0_11 = arith.constant 0 : index
      %24 = memref.load %arg4[%c0_10, %c0_11] : memref<1x1xf32, #tpu.memory_space<smem>>
      memref.store %23, %arg4[%c0_10, %c0_11] : memref<1x1xf32, #tpu.memory_space<smem>>
    } else {
    }
    return
  }
  func.func @transform_0(%arg0: i32, %arg1: i32) -> (i32, i32) {
    %c1_i32 = arith.constant 1 : i32
    %0 = arith.muli %arg0, %c1_i32 : i32
    %1 = arith.addi %0, %arg1 : i32
    %c0_i32 = arith.constant 0 : i32
    %2 = arith.minsi %1, %c0_i32 : i32
    %c0_i32_0 = arith.constant 0 : i32
    %c0_i32_1 = arith.constant 0 : i32
    return %2, %c0_i32_0 : i32, i32
  }
  func.func @transform_1(%arg0: i32, %arg1: i32) -> (i32, i32) {
    %c1_i32 = arith.constant 1 : i32
    %0 = arith.muli %arg0, %c1_i32 : i32
    %1 = arith.addi %0, %arg1 : i32
    %c0_i32 = arith.constant 0 : i32
    %2 = arith.minsi %1, %c0_i32 : i32
    %c0_i32_0 = arith.constant 0 : i32
    %c0_i32_1 = arith.constant 0 : i32
    return %2, %c0_i32_0 : i32, i32
  }
  func.func @transform_2(%arg0: i32, %arg1: i32) -> (i32, i32) {
    %c0_i32 = arith.constant 0 : i32
    %c0_i32_0 = arith.constant 0 : i32
    return %arg0, %c0_i32 : i32, i32
  }
}

</mosaic_0001>

<bundles_post_ra>
// kernel: tpu_custom_call.1
= control target key start
LH: loop header
LB: loop body
LE: loop exit
PB: predicated region body
PF: predicated region fallthrough
CT: control target
= control target key end

     0   :  { %7 = vsyncpa [#allocation4], 0  ;;  %s282_s0 = inlined_call_operand.hbm [shape: f32[16,128], index: 0, kind: input, shape index: {}]   ;;  %s283_s1 = inlined_call_operand.hbm [shape: f32[16,128], index: 1, kind: input, shape index: {}]   ;;  %s284_s2 = inlined_call_operand.hbm [shape: f32[1,1], index: 2, kind: output, shape index: {}]  }
   0x1   :  { %8 = vsyncpa [#allocation7], 0 }
   0x2   :  { %9 = vsyncpa [#allocation5], 0  ;;  %s226_s9 = smov [#allocation3]   ;;  %s166_s13 = scalar_lea.hbm %s282_s0, 256 }
   0x3   :  { %s21_s10 = sshll.u32 %s226_s9, 4  ;;  %p167_p0 = scmp.ne.s32.totalorder %s282_s0, %s166_s13  ;;  %s22_s10 = int_to_ptr.vmem [resolvable:$true] %s21_s10 }
   0x4   :  { %p170_p1 = scmp.lt.u32.totalorder %s166_s13, %s282_s0 }
   0x6   :  { %p172_p2 = pnand %p170_p1, %p167_p0 }
   0x8   :  { %175 = shalt.err (!%p172_p2)
}
   0x9   :  { %s176_s18 = scalar_lea.vmem %s22_s10, 256  ;;  %p181_p4 = scmp.lt.s32.totalorder %s22_s10, %s22_s10 }
   0xa   :  { %p177_p3 = scmp.ne.s32.totalorder %s22_s10, %s176_s18  ;;  %p182_p5 = scmp.lt.s32.totalorder %s176_s18, %s176_s18 }
   0xc   :  { %p183_p6 = por %p182_p5, %p181_p4 }
   0xe   :  { %p184_p7 = pnand %p183_p6, %p177_p3 }
  0x10   :  { %187 = shalt.err (!%p184_p7)
}
  0x11   :  { %s227_s19 = smov 128   ;;  %s228_s20 = smov 8  }
  0x12   :  { %27 = dma.hbm_to_vmem [thread:$0]  %s282_s0, 256, %s22_s10, [#allocation4], %s227_s19, %s227_s19, %s228_s20  }
  0x13   :  { %s229_s23 = smov [#allocation6]   ;;  %s188_s27 = scalar_lea.hbm %s283_s1, 256 }
  0x14   :  { %s39_s24 = sshll.u32 %s229_s23, 4  ;;  %p189_p8 = scmp.ne.s32.totalorder %s283_s1, %s188_s27  ;;  %s40_s24 = int_to_ptr.vmem [resolvable:$true] %s39_s24 }
  0x15   :  { %p192_p9 = scmp.lt.u32.totalorder %s188_s27, %s283_s1 }
  0x17   :  { %p194_p10 = pnand %p192_p9, %p189_p8 }
  0x19   :  { %197 = shalt.err (!%p194_p10)
}
  0x1a   :  { %s198_s4 = scalar_lea.vmem %s40_s24, 256  ;;  %p203_p12 = scmp.lt.s32.totalorder %s40_s24, %s40_s24 }
  0x1b   :  { %p199_p11 = scmp.ne.s32.totalorder %s40_s24, %s198_s4  ;;  %p204_p13 = scmp.lt.s32.totalorder %s198_s4, %s198_s4 }
  0x1d   :  { %p205_p0 = por %p204_p13, %p203_p12 }
  0x1f   :  { %p206_p1 = pnand %p205_p0, %p199_p11 }
  0x21   :  { %209 = shalt.err (!%p206_p1)
}
  0x22   :  { %45 = dma.hbm_to_vmem [thread:$0]  %s283_s1, 256, %s40_s24, [#allocation7], %s227_s19, %s227_s19, %s228_s20  }
  0x23   :  { %220 = dma.done.wait [#allocation4], 256  }
  0x24   :  { %221 = vsyncadd [#allocation4], 4294967040 }
  0x25   :  { %222 = dma.done.wait [#allocation7], 256  }
  0x26   :  { %223 = vsyncadd [#allocation7], 4294967040  ;;  %v77_v0 = vld [vmem:[#allocation3] sm:$0xff]  ;;  %v78_v1 = vld [vmem:[#allocation3 + $0x8] sm:$0xff]  ;;  %s210_s8 = scalar_lea.hbm %s284_s2, 16 }
  0x27   :  { %v79_v2 = vld [vmem:[#allocation6] sm:$0xff]  ;;  %v80_v3 = vld [vmem:[#allocation6 + $0x8] sm:$0xff]  ;;  %p211_p2 = scmp.ne.s32.totalorder %s284_s2, %s210_s8  ;;  %p214_p3 = scmp.lt.u32.totalorder %s210_s8, %s284_s2 }
  0x28   :  { %v81_v4 = vsub.f32 %v77_v0, %v79_v2  ;;  %v82_v5 = vsub.f32 %v78_v1, %v80_v3 }
  0x29   :  { %p216_p4 = pnand %p214_p3, %p211_p2 }
  0x2a   :  { %v83_v6 = vmul.f32 %v81_v4, %v81_v4  ;;  %v84_v7 = vmul.f32 %v82_v5, %v82_v5 }
  0x2c   :  { %v128_v8 = vadd.f32 %v84_v7, %v83_v6 }
  0x2e   :  { %129 = vadd.xlane.f32.xlu0 %v128_v8 }
  0xbb   :  { %v130_v9 = vpop.xlane.xlu0 %129 }
  0xbc   :  { %v131_v10 = vrot.slane %v130_v9, 4 }
  0xbe   :  { %v132_v11 = vadd.f32 %v131_v10, %v130_v9 }
  0xc0   :  { %v133_v12 = vrot.slane %v132_v11, 2 }
  0xc2   :  { %v134_v13 = vadd.f32 %v133_v12, %v132_v11 }
  0xc4   :  { %v135_v14 = vrot.slane %v134_v13, 1 }
  0xc6   :  { %v136_v15 = vadd.f32 %v135_v14, %v134_v13 }
  0xc8   :  { %159 = vpush %v136_v15 }
  0xf9   :  { %s160_s1 = spop %159 }
  0xfa   :  { %139 = sst [smem:[#allocation8]] %s160_s1 }
  0xfb   :  { %219 = shalt.err (!%p216_p4)
}
  0xfc   :  { %s230_s13 = smov [#allocation8]  }
  0xfd   :  { %147 = dma.smem_to_hbm %s230_s13, 16, %s284_s2, [#allocation5]  }
  0xfe   :  { %224 = dma.done.wait [#allocation5], 16  }
  0xff   :  { %225 = vsyncadd [#allocation5], 4294967280 }
 0x100   :  { %151 = sfence }
 0x101   :  { %152 = vsyncpa [#allocation4], 1 }
 0x102   :  { %153 = vsyncpa [#allocation7], 1 }
 0x103   :  { %154 = vsyncpa [#allocation5], 1 }

</bundles_post_ra>
